<compile_context>
chip_gen: v7x
topology: tpu7x:2x2x1
jax: 0.10.0
libtpu: 0.0.40
codegen_flags: <defaults>
</compile_context>

<pallas_src>
import jax
import jax.numpy as jnp
from jax.experimental import pallas as pl
from jax.experimental.pallas import tpu as pltpu

IN_F = 5
HID_F = 6


def mlp_kernel(x_ref, w1_ref, b1_ref, w2c_ref, b2_ref, o_ref):
    # x_ref:   [5, TB]  VMEM, batch on lanes (lane-dense loads)
    # w1_ref:  [6, 5]   VMEM   b1_ref:  [6, 1] VMEM
    # w2c_ref: [6, 1]   VMEM   b2_ref:  [1]    SMEM (scalar)
    # o_ref:   [1, TB]  VMEM, lane-dense stores
    x = x_ref[...]                                   # single lane-dense load
    w1 = w1_ref[...]                                 # [6, 5], one vreg

    # Layer 1 as a [6, TB] sublane-packed tile: 5 broadcasted FMAs.
    h = b1_ref[...]                                  # [6, 1] -> broadcasts below
    for i in range(IN_F):                            # unrolled (static)
        h = h + w1[:, i:i + 1] * x[i:i + 1, :]       # [6,1]*[1,TB] -> [6,TB]
    h = jnp.maximum(h, 0.0)                          # ReLU on packed tile

    # Layer 2: weighted sublane reduce (XLU) + scalar bias.
    z = jnp.sum(w2c_ref[...] * h, axis=0, keepdims=True) + b2_ref[0]   # [1, TB]

    # Numerically stable sigmoid via EUP tanh: sigmoid(z) = 0.5*(tanh(z/2)+1).
    o_ref[...] = (0.5 * jnp.tanh(0.5 * z) + 0.5).astype(o_ref.dtype)


def _round_up(a, m):
    return ((a + m - 1) // m) * m


def _choose_tiling(B, tb_cap, min_steps=4):
    """Pick a 128-multiple batch tile <= tb_cap with >=min_steps grid steps
    (when B allows), minimizing padding waste."""
    pB128 = _round_up(max(B, 1), 128)
    max_steps = pB128 // 128
    nsteps = min(max_steps, max(min_steps, pl.cdiv(pB128, tb_cap)))
    tb_eff = min(tb_cap, _round_up(pl.cdiv(pB128, nsteps), 128))
    nsteps = pl.cdiv(pB128, tb_eff)
    pB = nsteps * tb_eff
    return tb_eff, pB, nsteps


def mlp_forward_feature_major(x_fm, w1, b1, w2, b2, *, tb_cap=32768):
    """Fast path: x_fm is feature-major [5, B] (no wrapper transpose pass).

    Weights in PyTorch layout: w1 [6,5], b1 [6], w2 [1,6], b2 [1].
    Returns [B, 1].  tb_cap default (32K lanes) is safe on v7x; v5e/v6e with
    128 MiB VMEM may pass 65536-131072 for slightly better step amortization.
    """
    in_f, B = x_fm.shape
    assert in_f == IN_F

    tb_eff, pB, nsteps = _choose_tiling(B, tb_cap)

    x_fm = x_fm.astype(jnp.float32)
    if pB != B:
        x_fm = jnp.pad(x_fm, ((0, 0), (0, pB - B)))          # lane-pad only

    w1_f = w1.astype(jnp.float32)                             # [6, 5]
    b1_c = b1.reshape(HID_F, 1).astype(jnp.float32)           # [6, 1]
    w2_c = w2.reshape(1, HID_F).T.astype(jnp.float32)         # [6, 1]
    b2_f = b2.reshape(1).astype(jnp.float32)                  # [1]

    out_t = pl.pallas_call(
        mlp_kernel,
        out_shape=jax.ShapeDtypeStruct((1, pB), jnp.float32),
        grid=(nsteps,),
        in_specs=[
            pl.BlockSpec((IN_F, tb_eff), lambda i: (0, i)),    # x tile (VMEM)
            pl.BlockSpec((HID_F, IN_F), lambda i: (0, 0)),     # w1 (VMEM, constant)
            pl.BlockSpec((HID_F, 1), lambda i: (0, 0)),        # b1 col (VMEM)
            pl.BlockSpec((HID_F, 1), lambda i: (0, 0)),        # w2 col (VMEM)
            pl.BlockSpec(memory_space=pltpu.SMEM),             # b2 scalar (SMEM)
        ],
        out_specs=pl.BlockSpec((1, tb_eff), lambda i: (0, i)), # lane-dense out
        compiler_params=pltpu.CompilerParams(
            dimension_semantics=("parallel",),     # v7x: shard batch across 2 TCs
            vmem_limit_bytes=32 * 1024 * 1024,     # explicit budget (~10 MiB used)
        ),
    )(x_fm, w1_f, b1_c, w2_c, b2_f)

    return out_t[0, :B].reshape(B, 1)


def mlp_forward(x, w1, b1, w2, b2, *, tb_cap=32768):
    """PyTorch-layout path: x [B, 5].  Does one transpose pass, then the
    lane-dense feature-major kernel.  Prefer mlp_forward_feature_major when
    the producer can hand over x as [5, B]."""
    return mlp_forward_feature_major(x.T, w1, b1, w2, b2, tb_cap=tb_cap)


def init_params(key):
    """PyTorch nn.Linear default init: U[-1/sqrt(fan_in), +1/sqrt(fan_in)]."""
    k1, k2, k3, k4 = jax.random.split(key, 4)
    bound1 = 1.0 / jnp.sqrt(5.0)
    bound2 = 1.0 / jnp.sqrt(6.0)
    w1 = jax.random.uniform(k1, (HID_F, IN_F), jnp.float32, -bound1, bound1)
    b1 = jax.random.uniform(k2, (HID_F,), jnp.float32, -bound1, bound1)
    w2 = jax.random.uniform(k3, (1, HID_F), jnp.float32, -bound2, bound2)
    b2 = jax.random.uniform(k4, (1,), jnp.float32, -bound2, bound2)
    return w1, b1, w2, b2


def reference_forward(x, w1, b1, w2, b2):
    h = jnp.maximum(x @ w1.T + b1, 0.0)
    return jax.nn.sigmoid(h @ w2.T + b2)


if __name__ == "__main__":
    key = jax.random.PRNGKey(0)
    kx, kp = jax.random.split(key)
    w1, b1, w2, b2 = init_params(kp)

    # Small-batch check via the PyTorch-layout wrapper (matches toy usage).
    B_small = 8
    x_small = jax.random.normal(kx, (B_small, IN_F), jnp.float32)
    out_small = jax.block_until_ready(mlp_forward(x_small, w1, b1, w2, b2))
    ref_small = reference_forward(x_small, w1, b1, w2, b2)
    assert out_small.shape == (B_small, 1)
    assert jnp.allclose(out_small, ref_small, atol=1e-4, rtol=1e-4)

    # Multi-tile check via the feature-major fast path (exercises padding,
    # multiple grid steps, and the stable sigmoid on large-magnitude logits).
    B_big = 300
    x_big_fm = 50.0 * jax.random.normal(jax.random.PRNGKey(1), (IN_F, B_big),
                                        jnp.float32)   # big logits -> saturation
    out_big = jax.block_until_ready(
        mlp_forward_feature_major(x_big_fm, w1, b1, w2, b2, tb_cap=128))
    ref_big = reference_forward(x_big_fm.T, w1, b1, w2, b2)
    assert out_big.shape == (B_big, 1)
    assert jnp.all(jnp.isfinite(out_big))
    assert jnp.allclose(out_big, ref_big, atol=1e-4, rtol=1e-4)

    print("KERNEL_OK")
</pallas_src>

<mosaic_0001>
module attributes {stable_mosaic.version = 11 : i64} {
  func.func @mlp_kernel(%arg0: i32, %arg1: memref<5x128xf32, #tpu.memory_space<vmem>>, %arg2: memref<6x5xf32, #tpu.memory_space<vmem>>, %arg3: memref<6x1xf32, #tpu.memory_space<vmem>>, %arg4: memref<6x1xf32, #tpu.memory_space<vmem>>, %arg5: memref<1xf32, #tpu.memory_space<smem>>, %arg6: memref<1x128xf32, #tpu.memory_space<vmem>>) attributes {dimension_semantics = [#tpu.dimension_semantics<parallel>], iteration_bounds = array<i64: 1>, scalar_prefetch = 0 : i64, scratch_operands = 0 : i64, tpu.core_type = #tpu.core_type<tc>, window_params = [{transform_indices = @transform_0, window_bounds = array<i64: 5, 128>}, {pipeline_mode = #tpu.pipeline_mode<synchronous>, transform_indices = @transform_1, window_bounds = array<i64: 6, 5>}, {pipeline_mode = #tpu.pipeline_mode<synchronous>, transform_indices = @transform_2, window_bounds = array<i64: 6, 1>}, {pipeline_mode = #tpu.pipeline_mode<synchronous>, transform_indices = @transform_3, window_bounds = array<i64: 6, 1>}, {transform_indices = @transform_4, window_bounds = array<i64: 1>}, {transform_indices = @transform_5, window_bounds = array<i64: 1, 128>}]} {
    %c0 = arith.constant 0 : index
    %c0_0 = arith.constant 0 : index
    %0 = vector.load %arg1[%c0, %c0_0] : memref<5x128xf32, #tpu.memory_space<vmem>>, vector<5x128xf32>
    %c0_1 = arith.constant 0 : index
    %c0_2 = arith.constant 0 : index
    %1 = vector.load %arg2[%c0_1, %c0_2] : memref<6x5xf32, #tpu.memory_space<vmem>>, vector<6x5xf32>
    %c0_3 = arith.constant 0 : index
    %c0_4 = arith.constant 0 : index
    %2 = vector.load %arg3[%c0_3, %c0_4] : memref<6x1xf32, #tpu.memory_space<vmem>>, vector<6x1xf32>
    %3 = vector.extract_strided_slice %1 {offsets = [0, 0], sizes = [6, 1], strides = [1, 1]} : vector<6x5xf32> to vector<6x1xf32>
    %4 = vector.extract_strided_slice %0 {offsets = [0, 0], sizes = [1, 128], strides = [1, 1]} : vector<5x128xf32> to vector<1x128xf32>
    %5 = vector.broadcast %3 : vector<6x1xf32> to vector<6x128xf32>
    %6 = vector.broadcast %4 : vector<1x128xf32> to vector<6x128xf32>
    %7 = arith.mulf %5, %6 : vector<6x128xf32>
    %8 = vector.broadcast %2 : vector<6x1xf32> to vector<6x128xf32>
    %9 = arith.addf %8, %7 : vector<6x128xf32>
    %10 = vector.extract_strided_slice %1 {offsets = [0, 1], sizes = [6, 1], strides = [1, 1]} : vector<6x5xf32> to vector<6x1xf32>
    %11 = vector.extract_strided_slice %0 {offsets = [1, 0], sizes = [1, 128], strides = [1, 1]} : vector<5x128xf32> to vector<1x128xf32>
    %12 = vector.broadcast %10 : vector<6x1xf32> to vector<6x128xf32>
    %13 = vector.broadcast %11 : vector<1x128xf32> to vector<6x128xf32>
    %14 = arith.mulf %12, %13 : vector<6x128xf32>
    %15 = arith.addf %9, %14 : vector<6x128xf32>
    %16 = vector.extract_strided_slice %1 {offsets = [0, 2], sizes = [6, 1], strides = [1, 1]} : vector<6x5xf32> to vector<6x1xf32>
    %17 = vector.extract_strided_slice %0 {offsets = [2, 0], sizes = [1, 128], strides = [1, 1]} : vector<5x128xf32> to vector<1x128xf32>
    %18 = vector.broadcast %16 : vector<6x1xf32> to vector<6x128xf32>
    %19 = vector.broadcast %17 : vector<1x128xf32> to vector<6x128xf32>
    %20 = arith.mulf %18, %19 : vector<6x128xf32>
    %21 = arith.addf %15, %20 : vector<6x128xf32>
    %22 = vector.extract_strided_slice %1 {offsets = [0, 3], sizes = [6, 1], strides = [1, 1]} : vector<6x5xf32> to vector<6x1xf32>
    %23 = vector.extract_strided_slice %0 {offsets = [3, 0], sizes = [1, 128], strides = [1, 1]} : vector<5x128xf32> to vector<1x128xf32>
    %24 = vector.broadcast %22 : vector<6x1xf32> to vector<6x128xf32>
    %25 = vector.broadcast %23 : vector<1x128xf32> to vector<6x128xf32>
    %26 = arith.mulf %24, %25 : vector<6x128xf32>
    %27 = arith.addf %21, %26 : vector<6x128xf32>
    %28 = vector.extract_strided_slice %1 {offsets = [0, 4], sizes = [6, 1], strides = [1, 1]} : vector<6x5xf32> to vector<6x1xf32>
    %29 = vector.extract_strided_slice %0 {offsets = [4, 0], sizes = [1, 128], strides = [1, 1]} : vector<5x128xf32> to vector<1x128xf32>
    %30 = vector.broadcast %28 : vector<6x1xf32> to vector<6x128xf32>
    %31 = vector.broadcast %29 : vector<1x128xf32> to vector<6x128xf32>
    %32 = arith.mulf %30, %31 : vector<6x128xf32>
    %33 = arith.addf %27, %32 : vector<6x128xf32>
    %cst = arith.constant 0.000000e+00 : f32
    %34 = vector.broadcast %cst : f32 to vector<6x128xf32>
    %35 = arith.maximumf %33, %34 : vector<6x128xf32>
    %c0_5 = arith.constant 0 : index
    %c0_6 = arith.constant 0 : index
    %36 = vector.load %arg4[%c0_5, %c0_6] : memref<6x1xf32, #tpu.memory_space<vmem>>, vector<6x1xf32>
    %37 = vector.broadcast %36 : vector<6x1xf32> to vector<6x128xf32>
    %38 = arith.mulf %37, %35 : vector<6x128xf32>
    %cst_7 = arith.constant dense<0.000000e+00> : vector<128xf32>
    %39 = vector.multi_reduction <add>, %38, %cst_7 [0] : vector<6x128xf32> to vector<128xf32>
    %40 = vector.shape_cast %39 : vector<128xf32> to vector<1x128xf32>
    %c0_8 = arith.constant 0 : index
    %41 = memref.load %arg5[%c0_8] : memref<1xf32, #tpu.memory_space<smem>>
    %42 = vector.broadcast %41 : f32 to vector<1x128xf32>
    %43 = arith.addf %40, %42 : vector<1x128xf32>
    %cst_9 = arith.constant 5.000000e-01 : f32
    %44 = vector.broadcast %cst_9 : f32 to vector<1x128xf32>
    %45 = arith.mulf %44, %43 : vector<1x128xf32>
    %46 = math.tanh %45 : vector<1x128xf32>
    %cst_10 = arith.constant 5.000000e-01 : f32
    %47 = vector.broadcast %cst_10 : f32 to vector<1x128xf32>
    %48 = arith.mulf %47, %46 : vector<1x128xf32>
    %cst_11 = arith.constant 5.000000e-01 : f32
    %49 = vector.broadcast %cst_11 : f32 to vector<1x128xf32>
    %50 = arith.addf %48, %49 : vector<1x128xf32>
    %c0_12 = arith.constant 0 : index
    %c0_13 = arith.constant 0 : index
    %51 = vector.load %arg6[%c0_12, %c0_13] : memref<1x128xf32, #tpu.memory_space<vmem>>, vector<1x128xf32>
    tpu.vector_store %arg6[%c0_12, %c0_13], %50 {strides = array<i32>} : memref<1x128xf32, #tpu.memory_space<vmem>>, vector<1x128xf32>,
    return
  }
  func.func @transform_0(%arg0: i32) -> (i32, i32) {
    %c0_i32 = arith.constant 0 : i32
    %c0_i32_0 = arith.constant 0 : i32
    return %c0_i32, %arg0 : i32, i32
  }
  func.func @transform_1(%arg0: i32) -> (i32, i32) {
    %c0_i32 = arith.constant 0 : i32
    %c0_i32_0 = arith.constant 0 : i32
    %c0_i32_1 = arith.constant 0 : i32
    return %c0_i32, %c0_i32_0 : i32, i32
  }
  func.func @transform_2(%arg0: i32) -> (i32, i32) {
    %c0_i32 = arith.constant 0 : i32
    %c0_i32_0 = arith.constant 0 : i32
    %c0_i32_1 = arith.constant 0 : i32
    return %c0_i32, %c0_i32_0 : i32, i32
  }
  func.func @transform_3(%arg0: i32) -> (i32, i32) {
    %c0_i32 = arith.constant 0 : i32
    %c0_i32_0 = arith.constant 0 : i32
    %c0_i32_1 = arith.constant 0 : i32
    return %c0_i32, %c0_i32_0 : i32, i32
  }
  func.func @transform_4(%arg0: i32) -> i32 {
    %c0_i32 = arith.constant 0 : i32
    %c0_i32_0 = arith.constant 0 : i32
    return %c0_i32 : i32
  }
  func.func @transform_5(%arg0: i32) -> (i32, i32) {
    %c0_i32 = arith.constant 0 : i32
    %c0_i32_0 = arith.constant 0 : i32
    return %c0_i32, %arg0 : i32, i32
  }
}

</mosaic_0001>

<bundles_post_ra>
// kernel: tpu_custom_call.1
= control target key start
LH: loop header
LB: loop body
LE: loop exit
PB: predicated region body
PF: predicated region fallthrough
CT: control target
= control target key end

     0   :  { %v158_v1 = vmov 0   ;;  %v159_v2 = vmov 1   ;;  %s221_s0 = inlined_call_operand.vmem [shape: f32[5,128], index: 0, kind: input, shape index: {}]   ;;  %s222_s1 = inlined_call_operand.vmem [shape: f32[6,5], index: 1, kind: input, shape index: {}]   ;;  %s223_s2 = inlined_call_operand.vmem [shape: f32[6,1], index: 2, kind: input, shape index: {}]   ;;  %s224_s3 = inlined_call_operand.vmem [shape: f32[6,1], index: 3, kind: input, shape index: {}]   ;;  %s225_s4 = inlined_call_operand.<no memory space> [shape: f32[1], index: 4, kind: input, shape index: {}]   ;;  %s226_s5 = inlined_call_operand.hbm [shape: f32[1,128], index: 5, kind: output, shape index: {}]  }
   0x1   :  { %v23_v0 = vld [vmem:[%s222_s1] sm:$0x3f]  ;;  %125 = vset.pattern.permute.xlu0 %v158_v1  ;;  %126 = vset.pattern.permute.xlu1 %v159_v2 }
   0x2   :  { %27 = vperm.xlu0 %125, %v23_v0   ;;  %42 = vperm.xlu1 %126, %v23_v0  }
   0x3   :  { %11 = vsyncpa [#allocation4], 0  ;;  %v24_v3 = vld [vmem:[%s223_s2] sm:$0x3f]  ;;  %v160_v4 = vmov 2   ;;  %v161_v5 = vmov 3   ;;  %v30_v8 = vlaneseq  ;;  %v98_v46 = vstv %s225_s4 }
   0x4   :  { %v162_v6 = vmov 4   ;;  %v82_v7 = vld [vmem:[%s224_s3] sm:$0x3f]  ;;  %vm89_vm0 = vcmask 1045504   ;;  %s163_s24 = smov [#allocation3]  }
   0x5   :  { %v31_v9 = vshrl.u32 %v30_v8, 7  ;;  %v22_v11 = vld [vmem:[%s221_s0] sm:$0x1f]  ;;  %s111_s25 = sshll.u32 %s163_s24, 4  ;;  %s112_s25 = int_to_ptr.vmem [resolvable:$true] %s111_s25 }
   0x6   :  { %37 = vperm.xlu0 %125, %v24_v3   ;;  %127 = vset.pattern.permute.xlu1 %v160_v4  ;;  %s134_s26 = scalar_lea.vmem %s112_s25, 16  ;;  %s138_s27 = scalar_lea.vmem %s112_s25, 32 }
   0x7   :  { %52 = vperm.xlu1 %127, %v23_v0   ;;  %v32_v10 = vsub.s32 0, %v31_v9  ;;  %v47_v12 = vsub.s32 1, %v31_v9  ;;  %v57_v13 = vsub.s32 2, %v31_v9  ;;  %v67_v19 = vsub.s32 3, %v31_v9  ;;  %p135_p0 = scmp.ne.s32.totalorder %s112_s25, %s134_s26  ;;  %p139_p1 = scmp.lt.s32.totalorder %s112_s25, %s112_s25 }
   0x8   :  { %v77_v21 = vsub.s32 4, %v31_v9  ;;  %p140_p2 = scmp.lt.s32.totalorder %s138_s27, %s134_s26 }
   0x9   :  { %v33_v14 = vrot.slane %v22_v11, %v32_v10  ;;  %v48_v17 = vrot.slane %v22_v11, %v47_v12  ;;  %v58_v18 = vrot.slane %v22_v11, %v57_v13  ;;  %v68_v27 = vrot.slane %v22_v11, %v67_v19 }
   0xa   :  { %128 = vset.pattern.permute.xlu0 %v161_v5  ;;  %v78_v29 = vrot.slane %v22_v11, %v77_v21  ;;  %p141_p3 = por %p140_p2, %p139_p1 }
   0xb   :  { %62 = vperm.xlu0 %128, %v23_v0   ;;  %129 = vset.pattern.permute.xlu1 %v162_v6 }
   0xc   :  { %72 = vperm.xlu1 %129, %v23_v0   ;;  %p142_p4 = pnand %p141_p3, %p135_p0 }
   0xf   :  { %131 = vset.pattern.permute.xlu0 %v158_v1 }
  0x10   :  { %130 = vset.pattern.permute.xlu1 %v158_v1 }
  0x11   :  { %85 = vperm.xlu1 %130, %v82_v7  }
  0x81   :  { %v28_v15 = vpop.permute.xlu0 %27  ;;  %v43_v16 = vpop.permute.xlu1 %42 }
  0x82   :  { %v34_v20 = vmul.f32 %v33_v14, %v28_v15  ;;  %v49_v23 = vmul.f32 %v48_v17, %v43_v16 }
  0x85   :  { %v38_v22 = vpop.permute.xlu0 %37 }
  0x86   :  { %v40_v24 = vadd.f32 %v38_v22, %v34_v20  ;;  %v53_v25 = vpop.permute.xlu1 %52 }
  0x87   :  { %v59_v26 = vmul.f32 %v58_v18, %v53_v25 }
  0x88   :  { %v50_v28 = vadd.f32 %v49_v23, %v40_v24 }
  0x8a   :  { %v60_v30 = vadd.f32 %v59_v26, %v50_v28  ;;  %v63_v31 = vpop.permute.xlu0 %62 }
  0x8b   :  { %v69_v32 = vmul.f32 %v68_v27, %v63_v31  ;;  %v73_v33 = vpop.permute.xlu1 %72 }
  0x8c   :  { %v79_v34 = vmul.f32 %v78_v29, %v73_v33 }
  0x8d   :  { %v70_v35 = vadd.f32 %v69_v32, %v60_v30 }
  0x8f   :  { %v80_v36 = vadd.f32 %v79_v34, %v70_v35 }
  0x90   :  { %v86_v37 = vpop.permute.xlu1 %85 }
  0x91   :  { %v81_v38 = vmax.f32 %v80_v36, 0.0 }
  0x93   :  { %v88_v39 = vmul.f32 %v86_v37, %v81_v38 }
  0x95   :  { %v90_v40 = vsel %vm89_vm0, %v88_v39, 0.0 }
  0x96   :  { %v91_v41 = vrot.slane %v90_v40, 4 }
  0x98   :  { %v92_v42 = vadd.f32 %v91_v41, %v90_v40 }
  0x9a   :  { %v93_v43 = vrot.slane %v92_v42, 2 }
  0x9c   :  { %v94_v44 = vadd.f32 %v93_v43, %v92_v42 }
  0x9e   :  { %v95_v45 = vrot.slane %v94_v44, 1 }
  0xa0   :  { %v96_v47 = vadd.f32 %v95_v45, %v94_v44 }
  0xa2   :  { %v99_v48 = vadd.f32 %v98_v46, %v96_v47 }
  0xa4   :  { %v100_v49 = vmul.f32 0.5, %v99_v48 }
  0xa6   :  { %132 = vtanh.f32 %v100_v49 }
  0xb0   :  { %v133_v50 = vpop.eup %132 }
  0xb1   :  { %v102_v51 = vmul.f32 0.5, %v133_v50 }
  0xb3   :  { %v103_v52 = vadd.f32 0.5, %v102_v51 }
  0xb5   :  { %104 = vst [vmem:[#allocation3] sm:$0x1] %v103_v52 }
  0xb6   :  { %145 = shalt.err (!%p142_p4)
}
  0xb7   :  { %s146_s29 = scalar_lea.hbm %s226_s5, 16 }
  0xb8   :  { %p147_p5 = scmp.ne.s32.totalorder %s226_s5, %s146_s29  ;;  %p150_p6 = scmp.lt.u32.totalorder %s146_s29, %s226_s5 }
  0xba   :  { %p152_p7 = pnand %p150_p6, %p147_p5 }
  0xbc   :  { %155 = shalt.err (!%p152_p7)
}
  0xbd   :  { %114 = dma.vmem_to_hbm [thread:$0]  %s112_s25, 16, %s226_s5, [#allocation4]  }
  0xbe   :  { %156 = dma.done.wait [#allocation4], 16  }
  0xbf   :  { %157 = vsyncadd [#allocation4], 4294967280 }
  0xc0   :  { %118 = vsyncpa [#allocation4], 1 }

</bundles_post_ra>
